<compile_context>
chip_gen: v7x
topology: tpu7x:2x2x1
jax: 0.10.0
libtpu: 0.0.40
codegen_flags: <defaults>
</compile_context>

<pallas_src>
import jax
import jax.numpy as jnp
from jax import lax
from jax.experimental import pallas as pl
from jax.experimental.pallas import tpu as pltpu

EPS = 1e-6
_LANES = 128                 # lane-dense layout -> unmasked vector loads/stores
_SMALL_INPUT_ELEMS = 4096    # below this, pure-JAX fast path (fixed overheads dominate)


def _round_up(a: int, b: int) -> int:
    return ((a + b - 1) // b) * b


# ----------------------------------------------------------------------------- #
# Pure-JAX reference (literal translation of the PyTorch forward)
# Also used as the small-input fast path.
# ----------------------------------------------------------------------------- #
def bin_tokenize_reference(inputs, thresholds, *, bin_type, low, high):
    x = inputs.astype(jnp.float32)
    if bin_type == "uniform":
        x = jnp.clip(x, low + EPS, high - EPS)
    x = x[..., None]
    one_hot = jnp.logical_and(x < thresholds[1:], x >= thresholds[:-1])
    return jnp.argmax(one_hot.astype(jnp.uint8), axis=-1).astype(jnp.int32)


# ----------------------------------------------------------------------------- #
# Pallas kernels
# ----------------------------------------------------------------------------- #
def _make_uniform_kernel(n_bins: int, low: float, high: float):
    """Closed-form uniform binning (memory-bound): no threshold sweep at all."""
    inv_width = float(n_bins) / (high - low)

    def kernel(x_ref, o_ref):
        x = jnp.clip(x_ref[...], low + EPS, high - EPS)
        idx = jnp.floor((x - low) * inv_width).astype(jnp.int32)
        o_ref[...] = jnp.clip(idx, 0, n_bins - 1)

    return kernel


def _make_sweep_kernel(n_bins: int):
    """Exact threshold sweep (used for 'normal' bins to preserve boundary-exact semantics).

    For monotone thresholds:
        token = #{b in 1..n_bins-1 : x >= thr[b]}   if x < thr[n_bins]
              = 0                                    otherwise
    which equals argmax(one_hot) including the out-of-range -> 0 behaviour.
    The previous version's extra `valid`/-1 ops are folded into the count.
    """
    def kernel(thr_ref, x_ref, o_ref):
        # thr_ref: (n_bins+1,) f32 in SMEM (scalar prefetch)
        x = x_ref[...]

        def body(b, cnt):
            return cnt + (x >= thr_ref[b]).astype(jnp.int32)

        cnt = lax.fori_loop(1, n_bins, body, jnp.zeros(x.shape, jnp.int32), unroll=16)
        o_ref[...] = jnp.where(x < thr_ref[n_bins], cnt, 0)
        # TODO(synk): if the 'normal' sweep path ever becomes hot, either process the tile
        # in <=128-row chunks so x/cnt stay vreg-resident (v5e has a single vst slot), or
        # bin in probability space via ndtr (EUP) accepting boundary-band differences.

    return kernel


# ----------------------------------------------------------------------------- #
# Wrapper
# ----------------------------------------------------------------------------- #
def _choose_tile_rows(rows: int, max_tile_rows: int) -> int:
    """Sublane-aligned tile; aims for >=2 grid steps (v7x megacore) when there is work."""
    if rows <= 16:
        return rows                                  # single block == full dim (legal)
    tr = min(max_tile_rows, _round_up(-(-rows // 2), 8))
    return rows if tr >= rows else tr


def bin_tokenize_pallas(inputs, thresholds, *, bin_type, low, high,
                        max_tile_rows=1024, small_input_elems=_SMALL_INPUT_ELEMS):
    """inputs: arbitrary-shaped float array -> int32 tokens of the same shape."""
    n_bins = int(thresholds.shape[0]) - 1
    orig_shape = inputs.shape

    n = 1
    for d in orig_shape:
        n *= int(d)
    if n == 0:
        return jnp.zeros(orig_shape, jnp.int32)

    # Tiny inputs (the common action-tokenizer case, e.g. (2, 8, 7)): pad/reshape/launch
    # fixed costs dominate, so use the literal pure-JAX forward instead.
    if n < small_input_elems:
        return bin_tokenize_reference(inputs, thresholds,
                                      bin_type=bin_type, low=low, high=high)

    flat = jnp.ravel(inputs).astype(jnp.float32)     # layout-preserving flatten
    pad = (-n) % _LANES                              # pad only to a lane multiple (<=127)
    if pad:
        flat = jnp.pad(flat, (0, pad))
    rows = (n + pad) // _LANES
    x2d = flat.reshape(rows, _LANES)                 # layout-preserving reshape

    tile_rows = _choose_tile_rows(rows, max_tile_rows)
    if bin_type != "uniform":
        tile_rows = min(tile_rows, 256)              # keep sweep working set modest
    grid = (pl.cdiv(rows, tile_rows),)               # ragged last block handled by Pallas

    out_shape = jax.ShapeDtypeStruct((rows, _LANES), jnp.int32)
    compiler_params = pltpu.CompilerParams(dimension_semantics=("parallel",))
    # double-buffered in+out block <= 2 MiB -> safely under v5e's 16 MiB scoped-VMEM default

    if bin_type == "uniform":
        block = pl.BlockSpec((tile_rows, _LANES), lambda i: (i, 0))
        out = pl.pallas_call(
            _make_uniform_kernel(n_bins, float(low), float(high)),
            out_shape=out_shape,
            grid=grid,
            in_specs=[block],
            out_specs=block,
            compiler_params=compiler_params,
            cost_estimate=pl.CostEstimate(
                flops=6 * rows * _LANES,
                transcendentals=0,
                bytes_accessed=rows * _LANES * 8),
        )(x2d)
    else:
        block = pl.BlockSpec((tile_rows, _LANES), lambda i, thr: (i, 0))
        out = pl.pallas_call(
            _make_sweep_kernel(n_bins),
            out_shape=out_shape,
            grid_spec=pltpu.PrefetchScalarGridSpec(
                num_scalar_prefetch=1,               # thresholds -> SMEM
                grid=grid,
                in_specs=[block],
                out_specs=block,
            ),
            compiler_params=compiler_params,
            cost_estimate=pl.CostEstimate(
                flops=2 * rows * _LANES * n_bins,
                transcendentals=0,
                bytes_accessed=rows * _LANES * 8 + 4 * (n_bins + 1)),
        )(thresholds.astype(jnp.float32), x2d)

    out_flat = out.reshape(-1)
    if pad:
        out_flat = out_flat[:n]
    return out_flat.reshape(orig_shape)


# ----------------------------------------------------------------------------- #
# BinTokenizer (Pallas-backed)
# ----------------------------------------------------------------------------- #
class BinTokenizerPallas:
    """JAX/Pallas port of BinTokenizerPt."""

    def __init__(self, n_bins: int = 256, bin_type: str = "uniform",
                 low: float = 0.0, high: float = 1.0):
        self.n_bins = int(n_bins)
        self.bin_type = bin_type
        self.low = float(low)
        self.high = float(high)
        if bin_type == "uniform":
            if not self.low < self.high:
                raise ValueError("uniform binning requires low < high")
            thresholds = jnp.linspace(self.low, self.high, self.n_bins + 1, dtype=jnp.float32)
        elif bin_type == "normal":
            # PyTorch uses scipy.stats.norm.ppf; ndtri is the same inverse-normal-CDF.
            p = jnp.linspace(EPS, 1.0 - EPS, self.n_bins + 1, dtype=jnp.float32)
            thresholds = jax.scipy.special.ndtri(p).astype(jnp.float32)
        else:
            raise ValueError(f"Binning type {bin_type} not supported in BinTokenizer.")
        self.thresholds = thresholds

    @property
    def output_dim(self) -> int:
        return self.n_bins

    def __call__(self, inputs):
        return bin_tokenize_pallas(
            inputs, self.thresholds,
            bin_type=self.bin_type, low=self.low, high=self.high,
        )

    def decode(self, tokens):
        # pure-JAX glue (not the forward pass): tokens -> bin centers
        bin_avgs = (self.thresholds[1:] + self.thresholds[:-1]) / 2.0
        return jnp.take(bin_avgs, tokens, axis=0)


# ----------------------------------------------------------------------------- #
if __name__ == "__main__":
    key = jax.random.PRNGKey(0)
    k1, k2, k3, k4 = jax.random.split(key, 4)

    tok_u = BinTokenizerPallas(n_bins=256, bin_type="uniform", low=0.0, high=1.0)

    # Case 1: tiny action-like input (batch, horizon, act_dim) -> small-input fast path,
    # then forced through the Pallas path as well (1-row ragged tile).
    x1 = jax.random.uniform(k1, (2, 8, 7), dtype=jnp.float32, minval=-0.2, maxval=1.2)
    r1 = bin_tokenize_reference(x1, tok_u.thresholds, bin_type="uniform", low=0.0, high=1.0)
    t1 = jax.block_until_ready(tok_u(x1))
    assert t1.shape == x1.shape and t1.dtype == jnp.int32, (t1.shape, t1.dtype)
    assert jnp.array_equal(t1, r1), "uniform tiny-case (fast path) mismatch"
    t1p = jax.block_until_ready(bin_tokenize_pallas(
        x1, tok_u.thresholds, bin_type="uniform", low=0.0, high=1.0, small_input_elems=0))
    assert jnp.array_equal(t1p, r1), "uniform tiny-case (pallas path) mismatch"

    # Case 2: larger input, n % 128 == 0 -> no pad copy, 2-step parallel grid
    x2 = jax.random.uniform(k2, (2, 600, 32), dtype=jnp.float32)
    t2 = jax.block_until_ready(tok_u(x2))
    r2 = bin_tokenize_reference(x2, tok_u.thresholds, bin_type="uniform", low=0.0, high=1.0)
    assert jnp.array_equal(t2, r2), "uniform multi-tile mismatch"

    # Case 3: n % 128 != 0 -> lane pad + ragged last block
    x3 = jax.random.uniform(k3, (3, 257, 17), dtype=jnp.float32, minval=-0.5, maxval=1.5)
    t3 = jax.block_until_ready(tok_u(x3))
    r3 = bin_tokenize_reference(x3, tok_u.thresholds, bin_type="uniform", low=0.0, high=1.0)
    assert jnp.array_equal(t3, r3), "uniform ragged-tile mismatch"

    # Case 4: 'normal' binning (exact SMEM threshold sweep); out-of-range values -> token 0
    tok_n = BinTokenizerPallas(n_bins=64, bin_type="normal")
    x4 = 3.0 * jax.random.normal(k4, (8, 256, 32), dtype=jnp.float32)
    t4 = jax.block_until_ready(tok_n(x4))
    r4 = bin_tokenize_reference(x4, tok_n.thresholds, bin_type="normal", low=0.0, high=1.0)
    assert jnp.array_equal(t4, r4), "normal-binning mismatch"

    # decode round-trip sanity (pure JAX): shapes line up
    dec = jax.block_until_ready(tok_u.decode(t2))
    assert dec.shape == t2.shape

    print("KERNEL_OK")
</pallas_src>

<mosaic_0001>
module attributes {stable_mosaic.version = 11 : i64} {
  func.func @kernel(%arg0: i32, %arg1: memref<1x128xf32, #tpu.memory_space<vmem>>, %arg2: memref<1x128xi32, #tpu.memory_space<vmem>>) attributes {dimension_semantics = [#tpu.dimension_semantics<parallel>], iteration_bounds = array<i64: 1>, scalar_prefetch = 0 : i64, scratch_operands = 0 : i64, tpu.core_type = #tpu.core_type<tc>, window_params = [{transform_indices = @transform_0, window_bounds = array<i64: 1, 128>}, {transform_indices = @transform_1, window_bounds = array<i64: 1, 128>}]} {
    %c0 = arith.constant 0 : index
    %c0_0 = arith.constant 0 : index
    %0 = vector.load %arg1[%c0, %c0_0] : memref<1x128xf32, #tpu.memory_space<vmem>>, vector<1x128xf32>
    %cst = arith.constant 9.99999997E-7 : f32
    %cst_1 = arith.constant 0.999998986 : f32
    %1 = vector.broadcast %cst : f32 to vector<1x128xf32>
    %2 = arith.maximumf %1, %0 : vector<1x128xf32>
    %3 = vector.broadcast %cst_1 : f32 to vector<1x128xf32>
    %4 = arith.minimumf %3, %2 : vector<1x128xf32>
    %cst_2 = arith.constant 0.000000e+00 : f32
    %5 = vector.broadcast %cst_2 : f32 to vector<1x128xf32>
    %6 = arith.subf %4, %5 : vector<1x128xf32>
    %cst_3 = arith.constant 2.560000e+02 : f32
    %7 = vector.broadcast %cst_3 : f32 to vector<1x128xf32>
    %8 = arith.mulf %6, %7 : vector<1x128xf32>
    %9 = math.floor %8 : vector<1x128xf32>
    %10 = arith.fptosi %9 : vector<1x128xf32> to vector<1x128xi32>
    %c0_i32 = arith.constant 0 : i32
    %c255_i32 = arith.constant 255 : i32
    %11 = vector.broadcast %c0_i32 : i32 to vector<1x128xi32>
    %12 = arith.maxsi %11, %10 : vector<1x128xi32>
    %13 = vector.broadcast %c255_i32 : i32 to vector<1x128xi32>
    %14 = arith.minsi %13, %12 : vector<1x128xi32>
    %c0_4 = arith.constant 0 : index
    %c0_5 = arith.constant 0 : index
    %15 = vector.load %arg2[%c0_4, %c0_5] : memref<1x128xi32, #tpu.memory_space<vmem>>, vector<1x128xi32>
    tpu.vector_store %arg2[%c0_4, %c0_5], %14 {strides = array<i32>} : memref<1x128xi32, #tpu.memory_space<vmem>>, vector<1x128xi32>,
    return
  }
  func.func @transform_0(%arg0: i32) -> (i32, i32) {
    %c0_i32 = arith.constant 0 : i32
    %c0_i32_0 = arith.constant 0 : i32
    return %arg0, %c0_i32 : i32, i32
  }
  func.func @transform_1(%arg0: i32) -> (i32, i32) {
    %c0_i32 = arith.constant 0 : i32
    %c0_i32_0 = arith.constant 0 : i32
    return %arg0, %c0_i32 : i32, i32
  }
}

</mosaic_0001>

<bundles_post_ra>
// kernel: tpu_custom_call.1
= control target key start
LH: loop header
LB: loop body
LE: loop exit
PB: predicated region body
PF: predicated region fallthrough
CT: control target
= control target key end

     0   :  { %6 = vsyncpa [#allocation3], 0  ;;  %s135_s0 = inlined_call_operand.hbm [shape: f32[1,128], index: 0, kind: input, shape index: {}]   ;;  %s136_s1 = inlined_call_operand.hbm [shape: s32[1,128], index: 1, kind: output, shape index: {}]  }
   0x1   :  { %7 = vsyncpa [#allocation4], 0  ;;  %s99_s6 = smov [#allocation2]   ;;  %s51_s10 = scalar_lea.hbm %s135_s0, 16 }
   0x2   :  { %s14_s7 = sshll.u32 %s99_s6, 4  ;;  %p52_p0 = scmp.ne.s32.totalorder %s135_s0, %s51_s10  ;;  %s15_s7 = int_to_ptr.vmem [resolvable:$true] %s14_s7 }
   0x3   :  { %p55_p1 = scmp.lt.u32.totalorder %s51_s10, %s135_s0 }
   0x5   :  { %p57_p2 = pnand %p55_p1, %p52_p0 }
   0x7   :  { %60 = shalt.err (!%p57_p2)
}
   0x8   :  { %s61_s15 = scalar_lea.vmem %s15_s7, 16  ;;  %s65_s16 = scalar_lea.vmem %s15_s7, 32 }
   0x9   :  { %p62_p3 = scmp.ne.s32.totalorder %s15_s7, %s61_s15  ;;  %p66_p4 = scmp.lt.s32.totalorder %s15_s7, %s15_s7 }
   0xa   :  { %p67_p5 = scmp.lt.s32.totalorder %s65_s16, %s61_s15 }
   0xc   :  { %p68_p6 = por %p67_p5, %p66_p4 }
   0xe   :  { %p69_p7 = pnand %p68_p6, %p62_p3 }
  0x10   :  { %72 = shalt.err (!%p69_p7)
}
  0x11   :  { %17 = dma.hbm_to_vmem [thread:$0]  %s135_s0, 16, %s15_s7, [#allocation3]  }
  0x12   :  { %95 = dma.done.wait [#allocation3], 16  }
  0x13   :  { %96 = vsyncadd [#allocation3], 4294967280  ;;  %v21_v0 = vld [vmem:[#allocation2] sm:$0x1]  ;;  %s100_s19 = smov [#allocation5]  }
  0x14   :  { %v22_v1 = vmax.f32 %v21_v0, 1e-06  ;;  %s38_s20 = sshll.u32 %s100_s19, 4  ;;  %s39_s20 = int_to_ptr.vmem [resolvable:$true] %s38_s20 }
  0x15   :  { %s73_s21 = scalar_lea.vmem %s39_s20, 16  ;;  %s77_s0 = scalar_lea.vmem %s39_s20, 32 }
  0x16   :  { %v23_v2 = vmin.f32 %v22_v1, 0.999999  ;;  %p74_p8 = scmp.ne.s32.totalorder %s39_s20, %s73_s21  ;;  %p78_p9 = scmp.lt.s32.totalorder %s39_s20, %s39_s20 }
  0x17   :  { %p79_p10 = scmp.lt.s32.totalorder %s77_s0, %s73_s21 }
  0x18   :  { %v24_v3 = vmul.f32 256.0, %v23_v2 }
  0x19   :  { %p80_p11 = por %p79_p10, %p78_p9 }
  0x1a   :  { %v25_v4 = vfloor.f32 %v24_v3 }
  0x1b   :  { %p81_p12 = pnand %p80_p11, %p74_p8 }
  0x1c   :  { %v47_v5 = vtrunc.f32 %v25_v4 }
  0x1e   :  { %v48_v6 = vcvt.f32.s32 %v47_v5 }
  0x20   :  { %vm27_vm0 = vcmp.gt.s32.totalorder %v48_v6, 0 }
  0x21   :  { %v28_v7 = vsel %vm27_vm0, %v48_v6, 0 }
  0x22   :  { %vm29_vm1 = vcmp.lt.s32.totalorder %v28_v7, 255 }
  0x23   :  { %v30_v8 = vsel %vm29_vm1, %v28_v7, 255 }
  0x24   :  { %31 = vst [vmem:[#allocation5] sm:$0x1] %v30_v8 }
  0x25   :  { %84 = shalt.err (!%p81_p12)
}
  0x26   :  { %s85_s24 = scalar_lea.hbm %s136_s1, 16 }
  0x27   :  { %p86_p13 = scmp.ne.s32.totalorder %s136_s1, %s85_s24  ;;  %p89_p0 = scmp.lt.u32.totalorder %s85_s24, %s136_s1 }
  0x29   :  { %p91_p1 = pnand %p89_p0, %p86_p13 }
  0x2b   :  { %94 = shalt.err (!%p91_p1)
}
  0x2c   :  { %41 = dma.vmem_to_hbm [thread:$0]  %s39_s20, 16, %s136_s1, [#allocation4]  }
  0x2d   :  { %97 = dma.done.wait [#allocation4], 16  }
  0x2e   :  { %98 = vsyncadd [#allocation4], 4294967280 }
  0x2f   :  { %45 = vsyncpa [#allocation3], 1 }
  0x30   :  { %46 = vsyncpa [#allocation4], 1 }

</bundles_post_ra>
